<compile_context>
chip_gen: v5e
topology: v5e:2x2
jax: 0.10.0
libtpu: 0.0.40
codegen_flags: <defaults>
</compile_context>

<pallas_src>
import jax
import jax.numpy as jnp
from jax import lax
from jax.experimental import pallas as pl
from jax.experimental.pallas import tpu as pltpu

K = 3  # kernel_size == stride for MaxPool2d(kernel_size=3)


def _ceil_out(size: int) -> int:
    # PyTorch MaxPool2d output extent with ceil_mode=True, pad=0, k=s=3.
    return -((size - K) // -K) + 1


def _min_value(dtype):
    if jnp.issubdtype(dtype, jnp.floating):
        return jnp.finfo(dtype).min
    return jnp.iinfo(dtype).min


def _maxpool_kernel(x_ref, o_ref):
    # x_ref: (R, 3, Wp) -- R independent output rows, 3 H-taps, Wp = 3*Wo lanes
    # o_ref: (R, Wo)
    x = x_ref[...]
    h = jnp.max(x, axis=1)  # (R, Wp): 3-tap H reduce (cheap sublane reduce)

    wp = h.shape[-1]
    wo = o_ref.shape[-1]
    # Stride-3 W reduce via exact one-hot selection matmuls:
    #   (h @ S_t)[:, j] == h[:, 3*j + t]   (S_t one-hot -> products are x*1 / x*0)
    row = lax.broadcasted_iota(jnp.int32, (wp, wo), 0)
    col = lax.broadcasted_iota(jnp.int32, (wp, wo), 1)
    acc = None
    for t in range(K):
        sel = (row == col * K + t).astype(h.dtype)  # (Wp, Wo) one-hot selector
        tap = jnp.dot(
            h,
            sel,
            preferred_element_type=jnp.float32,
            precision=lax.Precision.HIGHEST,
        )
        acc = tap if acc is None else jnp.maximum(acc, tap)
    o_ref[...] = acc.astype(o_ref.dtype)


def maxpool2d_ceil(x, *, block_bytes=1 << 20):
    """x: (N, C, H, W) -> (N, C, Ho, Wo), matching
    torch.nn.MaxPool2d(kernel_size=3, ceil_mode=True)."""
    # TODO(synk): integer dtypes (also supported by torch MaxPool2d) would need a
    # non-MXU W-selection path; this implementation targets float inputs.
    N, C, H, W = x.shape
    Ho, Wo = _ceil_out(H), _ceil_out(W)
    Hp, Wp = Ho * K, Wo * K

    # Only materialize a pad when the spatial dims are not multiples of 3.
    if (Hp, Wp) != (H, W):
        x = jnp.pad(
            x,
            ((0, 0), (0, 0), (0, Hp - H), (0, Wp - W)),
            constant_values=_min_value(x.dtype),
        )

    # Free (contiguity-preserving) reshape: one row per output spatial row,
    # carrying its 3 H-tap source rows of padded width Wp. No transpose pass.
    rows = N * C * Ho
    xr = x.reshape(rows, K, Wp)

    # Rows per grid step: target ~block_bytes of data per input block, keep >=2
    # grid steps when possible (v7x megacore), align to a multiple of 8 sublanes.
    row_bytes = K * Wp * x.dtype.itemsize
    r = int(max(1, min(rows, block_bytes // row_bytes)))
    if r == rows and rows > 8:
        r = pl.cdiv(rows, 2)
    if r > 8:
        r = (r // 8) * 8
    grid = (pl.cdiv(rows, r),)

    out = pl.pallas_call(
        _maxpool_kernel,
        out_shape=jax.ShapeDtypeStruct((rows, Wo), x.dtype),
        grid=grid,
        in_specs=[pl.BlockSpec((r, K, Wp), lambda i: (i, 0, 0))],
        out_specs=pl.BlockSpec((r, Wo), lambda i: (i, 0)),
        compiler_params=pltpu.CompilerParams(
            dimension_semantics=("parallel",)
        ),
    )(xr)
    return out.reshape(N, C, Ho, Wo)


if __name__ == "__main__":
    key = jax.random.PRNGKey(0)
    x = jax.random.normal(key, (2, 4, 16, 16), dtype=jnp.float32)

    y = jax.block_until_ready(maxpool2d_ceil(x))

    # Pure-JAX reference with the same ceil_mode semantics.
    N, C, H, W = x.shape
    Ho, Wo = _ceil_out(H), _ceil_out(W)
    xp = jnp.pad(
        x,
        ((0, 0), (0, 0), (0, Ho * K - H), (0, Wo * K - W)),
        constant_values=-jnp.inf,
    )
    ref = xp.reshape(N, C, Ho, K, Wo, K).max(axis=(3, 5))

    assert y.shape == (N, C, Ho, Wo), y.shape
    assert jnp.allclose(y, ref), "mismatch vs reference"
    print("KERNEL_OK")
</pallas_src>

<mosaic_0001>
module attributes {stable_mosaic.version = 11 : i64} {
  func.func @_maxpool_kernel(%arg0: i32, %arg1: memref<24x3x18xf32, #tpu.memory_space<vmem>>, %arg2: memref<24x6xf32, #tpu.memory_space<vmem>>) attributes {dimension_semantics = [#tpu.dimension_semantics<parallel>], iteration_bounds = array<i64: 2>, scalar_prefetch = 0 : i64, scratch_operands = 0 : i64, tpu.core_type = #tpu.core_type<tc>, window_params = [{transform_indices = @transform_0, window_bounds = array<i64: 24, 3, 18>}, {transform_indices = @transform_1, window_bounds = array<i64: 24, 6>}]} {
    %c0 = arith.constant 0 : index
    %c0_0 = arith.constant 0 : index
    %c0_1 = arith.constant 0 : index
    %0 = vector.load %arg1[%c0, %c0_0, %c0_1] : memref<24x3x18xf32, #tpu.memory_space<vmem>>, vector<24x3x18xf32>
    %cst = arith.constant dense<0xFF800000> : vector<24x18xf32>
    %1 = vector.multi_reduction <maximumf>, %0, %cst [1] : vector<24x3x18xf32> to vector<24x18xf32>
    %2 = tpu.iota {dimensions = array<i32: 0>} : vector<18x6xi32>
    %3 = tpu.iota {dimensions = array<i32: 1>} : vector<18x6xi32>
    %c3_i32 = arith.constant 3 : i32
    %4 = vector.broadcast %c3_i32 : i32 to vector<18x6xi32>
    %5 = arith.muli %3, %4 : vector<18x6xi32>
    %c0_i32 = arith.constant 0 : i32
    %6 = vector.broadcast %c0_i32 : i32 to vector<18x6xi32>
    %7 = arith.addi %5, %6 : vector<18x6xi32>
    %8 = arith.cmpi eq, %2, %7 : vector<18x6xi32>
    %9 = arith.extui %8 : vector<18x6xi1> to vector<18x6xi32>
    %10 = arith.sitofp %9 : vector<18x6xi32> to vector<18x6xf32>
    %cst_2 = arith.constant dense<0.000000e+00> : vector<24x6xf32>
    %11 = tpu.matmul %1, %10, %cst_2 {dimension_numbers = #tpu.dot_dimension_numbers<[1], [0], [0], [1], [0, 0, 1, 1], [], []>, precision = #tpu.contract_precision<fp32>} : vector<24x18xf32>, vector<18x6xf32>, vector<24x6xf32> -> vector<24x6xf32>
    %c3_i32_3 = arith.constant 3 : i32
    %12 = vector.broadcast %c3_i32_3 : i32 to vector<18x6xi32>
    %13 = arith.muli %3, %12 : vector<18x6xi32>
    %c1_i32 = arith.constant 1 : i32
    %14 = vector.broadcast %c1_i32 : i32 to vector<18x6xi32>
    %15 = arith.addi %13, %14 : vector<18x6xi32>
    %16 = arith.cmpi eq, %2, %15 : vector<18x6xi32>
    %17 = arith.extui %16 : vector<18x6xi1> to vector<18x6xi32>
    %18 = arith.sitofp %17 : vector<18x6xi32> to vector<18x6xf32>
    %cst_4 = arith.constant dense<0.000000e+00> : vector<24x6xf32>
    %19 = tpu.matmul %1, %18, %cst_4 {dimension_numbers = #tpu.dot_dimension_numbers<[1], [0], [0], [1], [0, 0, 1, 1], [], []>, precision = #tpu.contract_precision<fp32>} : vector<24x18xf32>, vector<18x6xf32>, vector<24x6xf32> -> vector<24x6xf32>
    %20 = arith.maximumf %11, %19 : vector<24x6xf32>
    %c3_i32_5 = arith.constant 3 : i32
    %21 = vector.broadcast %c3_i32_5 : i32 to vector<18x6xi32>
    %22 = arith.muli %3, %21 : vector<18x6xi32>
    %c2_i32 = arith.constant 2 : i32
    %23 = vector.broadcast %c2_i32 : i32 to vector<18x6xi32>
    %24 = arith.addi %22, %23 : vector<18x6xi32>
    %25 = arith.cmpi eq, %2, %24 : vector<18x6xi32>
    %26 = arith.extui %25 : vector<18x6xi1> to vector<18x6xi32>
    %27 = arith.sitofp %26 : vector<18x6xi32> to vector<18x6xf32>
    %cst_6 = arith.constant dense<0.000000e+00> : vector<24x6xf32>
    %28 = tpu.matmul %1, %27, %cst_6 {dimension_numbers = #tpu.dot_dimension_numbers<[1], [0], [0], [1], [0, 0, 1, 1], [], []>, precision = #tpu.contract_precision<fp32>} : vector<24x18xf32>, vector<18x6xf32>, vector<24x6xf32> -> vector<24x6xf32>
    %29 = arith.maximumf %20, %28 : vector<24x6xf32>
    %c0_7 = arith.constant 0 : index
    %c0_8 = arith.constant 0 : index
    %30 = vector.load %arg2[%c0_7, %c0_8] : memref<24x6xf32, #tpu.memory_space<vmem>>, vector<24x6xf32>
    tpu.vector_store %arg2[%c0_7, %c0_8], %29 {strides = array<i32>} : memref<24x6xf32, #tpu.memory_space<vmem>>, vector<24x6xf32>,
    return
  }
  func.func @transform_0(%arg0: i32) -> (i32, i32, i32) {
    %c0_i32 = arith.constant 0 : i32
    %c0_i32_0 = arith.constant 0 : i32
    %c0_i32_1 = arith.constant 0 : i32
    return %arg0, %c0_i32, %c0_i32_0 : i32, i32, i32
  }
  func.func @transform_1(%arg0: i32) -> (i32, i32) {
    %c0_i32 = arith.constant 0 : i32
    %c0_i32_0 = arith.constant 0 : i32
    return %arg0, %c0_i32 : i32, i32
  }
}

</mosaic_0001>

<bundles_post_ra>
// kernel: tpu_custom_call.1
= control target key start
LH: loop header
LB: loop body
LE: loop exit
PB: predicated region body
PF: predicated region fallthrough
CT: control target
= control target key end

     0   :  { %s1267_s6 = smov 0   ;;  %s1618_s0 = inlined_call_operand.vmem [shape: f32[48,3,18], index: 0, kind: input, shape index: {}]   ;;  %s1619_s1 = inlined_call_operand.vmem [shape: f32[48,6], index: 1, kind: output, shape index: {}]  }
   0x1 LB: > { %s1186_s7 = sadd.s32 4294967295, %s1253_s6   ;;  %p1190_p0 = scmp.ge.s32.totalorder %s1253_s6, 1  ;;  %s1253_s6 = sphi %s1267_s6, %s11_s6  }
   0x2   : > { %p88_p1 = scmp.lt.s32.totalorder %s1253_s6, 3 }
   0x4   : > { %p89_p2 = pnand %p1190_p0, %p88_p1 }
   0x5   : > { %s108_s8 = smul.u32 (!%p89_p2), 24, %s1186_s7 }
   0x6   : > { %92 = sbr.rel (%p89_p2) target bundleno = 319 (0x13f), region = 24 }
   0x7   : > { %p109_p3 = scmp.lt.s32.totalorder (!%p89_p2), %s108_s8, 47  ;;  %s114_s13 = smul.u32 (!%p89_p2), 3, %s1186_s7 }
   0x9   : > { %p115_p4 = scmp.lt.s32.totalorder (!%p89_p2), %s114_s13, 5 }
   0xb   : > { %v313_v0 = vlaneseq  ;;  %s1625_s8 = smov (!%p109_p3, %s108_s8), 47  ;;  %vm388_vm0 = vcmask 1041408   ;;  %v1255_v8 = vmov 0.0   ;;  %vm144_vm4 = vcmask 141312   ;;  %s1627_s13 = smov (!%p115_p4, %s114_s13), 5 }
   0xc   : > { %s1191_s9 = sshll.u32 %s1625_s8, 2  ;;  %v1256_v19 = vmov 1.0   ;;  %vm353_vm5 = vcmask 1041409   ;;  %vm355_vm6 = vcmask 1042434   ;;  %vm357_vm7 = vcmask 1043459   ;;  %s1192_s14 = sshll.u32 %s1627_s13, 3 }
   0xd   : > { %v1277_v1 = vshrl.u32 %v313_v0, 7  ;;  %v318_v2 = vand.u32 127, %v313_v0  ;;  %s1313_s12 = scalar_lea.vmem %s1618_s0, %s1191_s9  ;;  %vm359_vm8 = vcmask 1044484   ;;  %vm361_vm9 = vcmask 1045509   ;;  %s118_s17 = scalar_lea.vmem %s1619_s1, %s1192_s14 }
   0xe   : > { %v128_v15 = vld [vmem:[%s1313_s12 + $0x20] sm:$0x7]  ;;  %v129_v16 = vld [vmem:[%s1313_s12 + $0x24] sm:$0x7]  ;;  %v130_v18 = vld [vmem:[%s1313_s12 + $0x28] sm:$0x7] }
   0xf   : > { %v1280_v3 = vadd.s32 16, %v1277_v1  ;;  %v1282_v4 = vmul.u32 3, %v318_v2  ;;  %v1285_v5 = vadd.s32 8, %v1277_v1  ;;  %v131_v22 = vld [vmem:[%s1313_s12 + $0x2c] sm:$0x7]  ;;  %v201_v25 = vsel %vm144_vm4, %v128_v15, -inf }
  0x10   : > { %v132_v23 = vld [vmem:[%s1313_s12 + $0x30] sm:$0x7]  ;;  %v208_v26 = vsel %vm144_vm4, %v129_v16, -inf  ;;  %v215_v27 = vsel %vm144_vm4, %v130_v18, -inf  ;;  %v133_v30 = vld [vmem:[%s1313_s12 + $0x34] sm:$0x7] }
  0x11   : > { %vm322_vm1 = vcmp.eq.s32.totalorder %v1280_v3, %v1282_v4  ;;  %vm1291_vm2 = vcmp.eq.s32.totalorder %v1285_v5, %v1282_v4  ;;  %vm1297_vm3 = vcmp.eq.s32.totalorder %v1277_v1, %v1282_v4  ;;  %v202_v31 = vrot.slane %v201_v25, 4  ;;  %v134_v34 = vld [vmem:[%s1313_s12 + $0x38] sm:$0x7]  ;;  %v135_v43 = vld [vmem:[%s1313_s12 + $0x3c] sm:$0x7] }
  0x12   : > { %v1302_v9 = vsel %vm322_vm1, 1.0, %v1255_v8  ;;  %v1194_v10 = vsel %vm1291_vm2, 1.0, %v1255_v8  ;;  %v1193_v11 = vsel %vm1297_vm3, 1.0, %v1255_v8  ;;  %v209_v32 = vrot.slane %v208_v26, 4  ;;  %v136_v15 = vld [vmem:[%s1313_s12 + $0x40] sm:$0x7] }
  0x13   : > { %1231 = vmatpush.msk.msra.mxu2 %vm388_vm0, %v1302_v9  ;;  %v390_v12 = vsel %vm388_vm0, %v1302_v9, 0  ;;  %v456_v13 = vsub.f32 %v1194_v10, %v1194_v10  ;;  %v1319_v14 = vsub.f32 %v1193_v11, %v1193_v11  ;;  %1196 = vmatpush.msk.msra.mxu0 %vm388_vm0, %v1302_v9  ;;  %v216_v35 = vrot.slane %v215_v27, 4 }
  0x14   : > { %v450_v17 = vsub.f32 %v390_v12, %v390_v12  ;;  %v222_v36 = vsel %vm144_vm4, %v131_v22, -inf  ;;  %v229_v37 = vsel %vm144_vm4, %v132_v23, -inf  ;;  %v203_v40 = vmax.f32 %v201_v25, %v202_v31  ;;  %v137_v25 = vld [vmem:[%s1313_s12 + $0x44] sm:$0x7] }
  0x15   : > { %1232 = vmatpush.msk.msra.mxu2 %vm1291_vm2, %v1256_v19  ;;  %v457_v20 = vand.u32 4294901760, %v456_v13  ;;  %v463_v21 = vand.u32 4294901760, %v1319_v14  ;;  %1197 = vmatpush.msk.msra.mxu0 %vm1291_vm2, %v1256_v19  ;;  %v210_v41 = vmax.f32 %v208_v26, %v209_v32  ;;  %v217_v44 = vmax.f32 %v215_v27, %v216_v35 }
  0x16   : > { %v451_v24 = vand.u32 4294901760, %v450_v17  ;;  %v223_v45 = vrot.slane %v222_v36, 4  ;;  %v230_v46 = vrot.slane %v229_v37, 4  ;;  %v204_v47 = vrot.slane %v203_v40, 2 }
  0x17   : > { %v458_v28 = vsub.f32 %v456_v13, %v457_v20  ;;  %1233 = vmatpush.msk.msra.mxu2 %vm1297_vm3, %v1256_v19  ;;  %v1342_v29 = vsub.f32 %v1319_v14, %v463_v21  ;;  %1198 = vmatpush.msk.msra.mxu0 %vm1297_vm3, %v1256_v19  ;;  %v211_v48 = vrot.slane %v210_v41, 2  ;;  %v236_v49 = vsel %vm144_vm4, %v133_v30, -inf }
  0x18   : > { %v452_v33 = vsub.f32 %v450_v17, %v451_v24  ;;  %v243_v50 = vsel %vm144_vm4, %v134_v34, -inf  ;;  %v218_v51 = vrot.slane %v217_v44, 2  ;;  %v224_v52 = vmax.f32 %v222_v36, %v223_v45  ;;  %v139_v36 = vld [vmem:[%s1313_s12 + $0x4c] sm:$0x7]  ;;  %v140_v45 = vld [vmem:[%s1313_s12 + $0x50] sm:$0x7] }
  0x19   : > { %495 = vmatpush.msrb.mxu2 %v450_v17  ;;  %572 = vmatpush.msrb.mxu0 %v451_v24  ;;  %v459_v38 = vand.u32 4294901760, %v458_v28  ;;  %v465_v39 = vand.u32 4294901760, %v1342_v29  ;;  %v231_v53 = vmax.f32 %v229_v37, %v230_v46  ;;  %v237_v54 = vrot.slane %v236_v49, 4  ;;  %v138_v29 = vld [vmem:[%s1313_s12 + $0x48] sm:$0x7] }
  0x1a   : > { %v453_v42 = vand.u32 4294901760, %v452_v33  ;;  %v205_v55 = vmax.f32 %v203_v40, %v204_v47  ;;  %v212_v56 = vmax.f32 %v210_v41, %v211_v48  ;;  %v244_v57 = vrot.slane %v243_v50, 4  ;;  %v141_v46 = vld [vmem:[%s1313_s12 + $0x54] sm:$0x7] }
  0x1b   : > { %498 = vmatpush.msrb.mxu2 %v456_v13  ;;  %576 = vmatpush.msrb.mxu0 %v457_v20  ;;  %v250_v58 = vsel %vm144_vm4, %v135_v43, -inf  ;;  %v219_v59 = vmax.f32 %v217_v44, %v218_v51  ;;  %v225_v60 = vrot.slane %v224_v52, 2  ;;  %v232_v61 = vrot.slane %v231_v53, 2 }
  0x1c   : > { %1234 = vmatpush.msra.mxu3 %v453_v42  ;;  %454 = vmatpush.msra.mxu1 %v453_v42  ;;  %v238_v62 = vmax.f32 %v236_v49, %v237_v54  ;;  %vm363_vm10 = vcmask 1046534   ;;  %v206_v63 = vrot.slane %v205_v55, 1  ;;  %v213_v0 = vrot.slane %v212_v56, 1 }
  0x1d   : > { %501 = vmatpush.msrb.mxu2 %v1319_v14  ;;  %580 = vmatpush.msrb.mxu0 %v463_v21  ;;  %v245_v2 = vmax.f32 %v243_v50, %v244_v57  ;;  %v251_v10 = vrot.slane %v250_v58, 4  ;;  %v220_v11 = vrot.slane %v219_v59, 1  ;;  %v226_v12 = vmax.f32 %v224_v52, %v225_v60  ;;  %v142_v60 = vld [vmem:[%s1313_s12 + $0x58] sm:$0x7] }
  0x1e   : > { %1235 = vmatpush.msra.mxu3 %v459_v38  ;;  %460 = vmatpush.msra.mxu1 %v459_v38  ;;  %v233_v13 = vmax.f32 %v231_v53, %v232_v61  ;;  %v239_v14 = vrot.slane %v238_v62, 2  ;;  %vm365_vm11 = vcmask 1047559   ;;  %v207_v16 = vmax.f32 %v205_v55, %v206_v63 }
  0x1f   : > { %v214_v17 = vmax.f32 %v212_v56, %v213_v0  ;;  %v246_v18 = vrot.slane %v245_v2, 2  ;;  %v252_v20 = vmax.f32 %v250_v58, %v251_v10  ;;  %vm381_vm12 = vcmask 146432  }
  0x20   : > { %1236 = vmatpush.msra.mxu3 %v465_v39  ;;  %466 = vmatpush.msra.mxu1 %v465_v39  ;;  %v221_v21 = vmax.f32 %v219_v59, %v220_v11  ;;  %v227_v22 = vrot.slane %v226_v12, 1  ;;  %v234_v23 = vrot.slane %v233_v13, 1  ;;  %v240_v24 = vmax.f32 %v238_v62, %v239_v14 }
  0x21   : > { %v247_v26 = vmax.f32 %v245_v2, %v246_v18  ;;  %v253_v27 = vrot.slane %v252_v20, 2  ;;  %v367_v28 = vsel %vm353_vm5, %v214_v17, %v207_v16  ;;  %v257_v30 = vsel %vm144_vm4, %v136_v15, -inf  ;;  %v143_v16 = vld [vmem:[%s1313_s12 + $0x5c] sm:$0x7] }
  0x22   : > { %1199 = vmatpush.msk.msrb.mxu3 %vm388_vm0, %v1302_v9  ;;  %1202 = vmatpush.msk.msrb.mxu1 %vm388_vm0, %v1302_v9  ;;  %v228_v31 = vmax.f32 %v226_v12, %v227_v22  ;;  %v235_v32 = vmax.f32 %v233_v13, %v234_v23  ;;  %v241_v33 = vrot.slane %v240_v24, 1  ;;  %v368_v34 = vsel %vm355_vm6, %v221_v21, %v367_v28 }
  0x23   : > { %v248_v9 = vrot.slane %v247_v26, 1  ;;  %v254_v35 = vmax.f32 %v252_v20, %v253_v27  ;;  %v258_v37 = vrot.slane %v257_v30, 4  ;;  %v264_v38 = vsel %vm144_vm4, %v137_v25, -inf }
  0x24   : > { %1200 = vmatpush.msk.msrb.mxu3 %vm1291_vm2, %v1256_v19  ;;  %1203 = vmatpush.msk.msrb.mxu1 %vm1291_vm2, %v1256_v19  ;;  %v242_v39 = vmax.f32 %v240_v24, %v241_v33  ;;  %v369_v40 = vsel %vm357_vm7, %v228_v31, %v368_v34  ;;  %v265_v41 = vrot.slane %v264_v38, 4  ;;  %v271_v42 = vsel %vm144_vm4, %v138_v29, -inf }
  0x25   : > { %v249_v6 = vmax.f32 %v247_v26, %v248_v9  ;;  %v255_v43 = vrot.slane %v254_v35, 1  ;;  %v370_v44 = vsel %vm359_vm8, %v235_v32, %v369_v40  ;;  %v259_v47 = vmax.f32 %v257_v30, %v258_v37  ;;  %v120_v37 = vld [vmem:[%s1313_s12] sm:$0x7] }
  0x26   : > { %1201 = vmatpush.msk.msrb.mxu3 %vm1297_vm3, %v1256_v19  ;;  %1204 = vmatpush.msk.msrb.mxu1 %vm1297_vm3, %v1256_v19  ;;  %v371_v48 = vsel %vm361_vm9, %v242_v39, %v370_v44  ;;  %v266_v49 = vmax.f32 %v264_v38, %v265_v41  ;;  %v272_v50 = vrot.slane %v271_v42, 4  ;;  %v278_v51 = vsel %vm144_vm4, %v139_v36, -inf }
  0x27   : > { %v256_v52 = vmax.f32 %v254_v35, %v255_v43  ;;  %v372_v53 = vsel %vm363_vm10, %v249_v6, %v371_v48  ;;  %v260_v54 = vrot.slane %v259_v47, 2  ;;  %v279_v7 = vrot.slane %v278_v51, 4 }
  0x28   : > { %v267_v55 = vrot.slane %v266_v49, 2  ;;  %v273_v56 = vmax.f32 %v271_v42, %v272_v50  ;;  %v285_v57 = vsel %vm144_vm4, %v140_v45, -inf  ;;  %v292_v58 = vsel %vm144_vm4, %v141_v46, -inf  ;;  %v121_v42 = vld [vmem:[%s1313_s12 + $0x4] sm:$0x7] }
  0x29   : > { %v373_v59 = vsel %vm365_vm11, %v256_v52, %v372_v53  ;;  %v261_v61 = vmax.f32 %v259_v47, %v260_v54  ;;  %v280_v62 = vmax.f32 %v278_v51, %v279_v7  ;;  %v286_v63 = vrot.slane %v285_v57, 4  ;;  %v122_v46 = vld [vmem:[%s1313_s12 + $0x8] sm:$0x7]  ;;  %v123_v47 = vld [vmem:[%s1313_s12 + $0xc] sm:$0x7] }
  0x2a   : > { %v384_v0 = vsel %vm381_vm12, %v373_v59, 0  ;;  %v268_v2 = vmax.f32 %v266_v49, %v267_v55  ;;  %v274_v10 = vrot.slane %v273_v56, 2  ;;  %v293_v11 = vrot.slane %v292_v58, 4  ;;  %v124_v7 = vld [vmem:[%s1313_s12 + $0x10] sm:$0x7] }
  0x2b   : > { %v1394_v12 = vand.u32 4294901760, %v384_v0  ;;  %v262_v13 = vrot.slane %v261_v61, 1  ;;  %v281_v14 = vrot.slane %v280_v62, 2  ;;  %v287_v15 = vmax.f32 %v285_v57, %v286_v63  ;;  %v125_v63 = vld [vmem:[%s1313_s12 + $0x14] sm:$0x7] }
  0x2c   : > { %v269_v17 = vrot.slane %v268_v2, 1  ;;  %v275_v18 = vmax.f32 %v273_v56, %v274_v10  ;;  %v294_v20 = vmax.f32 %v292_v58, %v293_v11  ;;  %v299_v21 = vsel %vm144_vm4, %v142_v60, -inf }
  0x2d   : > { %v1399_v22 = vsub.f32 %v384_v0, %v1394_v12  ;;  %472 = vmatmul.f32.vlgmr.msra.gmra.mxu3 %v1394_v12  ;;  %v263_v23 = vmax.f32 %v261_v61, %v262_v13  ;;  %v282_v24 = vmax.f32 %v280_v62, %v281_v14  ;;  %v288_v25 = vrot.slane %v287_v15, 2 }
  0x2e   : > { %v270_v26 = vmax.f32 %v268_v2, %v269_v17  ;;  %v276_v27 = vrot.slane %v275_v18, 1  ;;  %v295_v28 = vrot.slane %v294_v20, 2  ;;  %v300_v29 = vrot.slane %v299_v21, 4 }
  0x2f   : > { %v1403_v30 = vand.u32 4294901760, %v1399_v22  ;;  %v283_v31 = vrot.slane %v282_v24, 1  ;;  %v289_v32 = vmax.f32 %v287_v15, %v288_v25  ;;  %v306_v33 = vsel %vm144_vm4, %v143_v16, -inf }
  0x30   : > { %v277_v34 = vmax.f32 %v275_v18, %v276_v27  ;;  %v296_v9 = vmax.f32 %v294_v20, %v295_v28  ;;  %v301_v35 = vmax.f32 %v299_v21, %v300_v29  ;;  %v307_v36 = vrot.slane %v306_v33, 4  ;;  %v126_v18 = vld [vmem:[%s1313_s12 + $0x18] sm:$0x7] }
  0x31   : > { %v422_v38 = vsub.f32 %v1399_v22, %v1403_v30  ;;  %v284_v39 = vmax.f32 %v282_v24, %v283_v31  ;;  %v290_v40 = vrot.slane %v289_v32, 1  ;;  %v374_v41 = vsel %vm353_vm5, %v270_v26, %v263_v23 }
  0x32   : > { %v297_v6 = vrot.slane %v296_v9, 1  ;;  %v302_v43 = vrot.slane %v301_v35, 2  ;;  %v308_v44 = vmax.f32 %v306_v33, %v307_v36  ;;  %v375_v45 = vsel %vm355_vm6, %v277_v34, %v374_v41 }
  0x33   : > { %v1414_v48 = vand.u32 4294901760, %v422_v38  ;;  %v291_v49 = vmax.f32 %v289_v32, %v290_v40  ;;  %v376_v50 = vsel %vm357_vm7, %v284_v39, %v375_v45  ;;  %v145_v51 = vsel %vm144_vm4, %v120_v37, -inf  ;;  %v127_v38 = vld [vmem:[%s1313_s12 + $0x1c] sm:$0x7] }
  0x34   : > { %v298_v52 = vmax.f32 %v296_v9, %v297_v6  ;;  %v303_v53 = vmax.f32 %v301_v35, %v302_v43  ;;  %v309_v54 = vrot.slane %v308_v44, 2  ;;  %v146_v55 = vrot.slane %v145_v51, 4 }
  0x35   : > { %424 = vmatmul.f32.vlgmr.msra.gmra.mxu2 %v1414_v48  ;;  %v377_v56 = vsel %vm359_vm8, %v291_v49, %v376_v50  ;;  %v152_v57 = vsel %vm144_vm4, %v121_v42, -inf  ;;  %v159_v58 = vsel %vm144_vm4, %v122_v46, -inf  ;;  %v166_v59 = vsel %vm144_vm4, %v123_v47, -inf }
  0x36   : > { %v304_v60 = vrot.slane %v303_v53, 1  ;;  %v310_v61 = vmax.f32 %v308_v44, %v309_v54  ;;  %v378_v62 = vsel %vm361_vm9, %v298_v52, %v377_v56  ;;  %v147_v0 = vmax.f32 %v145_v51, %v146_v55 }
  0x37   : > { %v153_v2 = vrot.slane %v152_v57, 4  ;;  %v160_v10 = vrot.slane %v159_v58, 4  ;;  %v167_v11 = vrot.slane %v166_v59, 4  ;;  %v173_v13 = vsel %vm144_vm4, %v124_v7, -inf }
  0x38   : > { %v305_v14 = vmax.f32 %v303_v53, %v304_v60  ;;  %v311_v15 = vrot.slane %v310_v61, 1  ;;  %v148_v16 = vrot.slane %v147_v0, 2  ;;  %v174_v17 = vrot.slane %v173_v13, 4 }
  0x39   : > { %v154_v20 = vmax.f32 %v152_v57, %v153_v2  ;;  %v161_v21 = vmax.f32 %v159_v58, %v160_v10  ;;  %v168_v23 = vmax.f32 %v166_v59, %v167_v11  ;;  %v180_v24 = vsel %vm144_vm4, %v125_v63, -inf }
  0x3a   : > { %v312_v25 = vmax.f32 %v310_v61, %v311_v15  ;;  %v379_v26 = vsel %vm363_vm10, %v305_v14, %v378_v62  ;;  %v149_v27 = vmax.f32 %v147_v0, %v148_v16  ;;  %v175_v28 = vmax.f32 %v173_v13, %v174_v17 }
  0x3b   : > { %v155_v29 = vrot.slane %v154_v20, 2  ;;  %v162_v31 = vrot.slane %v161_v21, 2  ;;  %v169_v32 = vrot.slane %v168_v23, 2  ;;  %v181_v33 = vrot.slane %v180_v24, 4 }
  0x3c   : > { %v380_v34 = vsel %vm365_vm11, %v312_v25, %v379_v26  ;;  %v150_v9 = vrot.slane %v149_v27, 1  ;;  %v176_v35 = vrot.slane %v175_v28, 2  ;;  %v187_v36 = vsel %vm144_vm4, %v126_v18, -inf }
  0x3d   : > { %v386_v37 = vsel %vm381_vm12, %v380_v34, 0  ;;  %v156_v39 = vmax.f32 %v154_v20, %v155_v29  ;;  %v163_v40 = vmax.f32 %v161_v21, %v162_v31  ;;  %v170_v41 = vmax.f32 %v168_v23, %v169_v32 }
  0x3e   : > { %v1434_v42 = vand.u32 4294901760, %v386_v37  ;;  %v151_v6 = vmax.f32 %v149_v27, %v150_v9  ;;  %v177_v43 = vmax.f32 %v175_v28, %v176_v35  ;;  %v182_v44 = vmax.f32 %v180_v24, %v181_v33 }
  0x3f   : > { %v157_v45 = vrot.slane %v156_v39, 1  ;;  %v164_v46 = vrot.slane %v163_v40, 1  ;;  %v171_v47 = vrot.slane %v170_v41, 1  ;;  %v188_v49 = vrot.slane %v187_v36, 4 }
  0x40   : > { %v1437_v50 = vsub.f32 %v386_v37, %v1434_v42  ;;  %476 = vmatmul.f32.gmra.mxu3 %v1434_v42  ;;  %v178_v51 = vrot.slane %v177_v43, 1  ;;  %v183_v52 = vrot.slane %v182_v44, 2  ;;  %v194_v53 = vsel %vm144_vm4, %v127_v38, -inf }
  0x41   : > { %v158_v54 = vmax.f32 %v156_v39, %v157_v45  ;;  %v165_v7 = vmax.f32 %v163_v40, %v164_v46  ;;  %v172_v55 = vmax.f32 %v170_v41, %v171_v47  ;;  %v189_v56 = vmax.f32 %v187_v36, %v188_v49 }
  0x42   : > { %v1442_v57 = vand.u32 4294901760, %v1437_v50  ;;  %v179_v58 = vmax.f32 %v177_v43, %v178_v51  ;;  %v184_v59 = vmax.f32 %v182_v44, %v183_v52  ;;  %v195_v60 = vrot.slane %v194_v53, 4 }
  0x43   : > { %v190_v61 = vrot.slane %v189_v56, 2  ;;  %v354_v62 = vsel %vm353_vm5, %v158_v54, %v151_v6  ;;  %v1446_v63 = vadd.s32 1, %v1282_v4 }
  0x44   : > { %v430_v0 = vsub.f32 %v1437_v50, %v1442_v57  ;;  %v185_v2 = vrot.slane %v184_v59, 1  ;;  %v196_v10 = vmax.f32 %v194_v53, %v195_v60  ;;  %v356_v11 = vsel %vm355_vm6, %v165_v7, %v354_v62 }
  0x45   : > { %v191_v13 = vmax.f32 %v189_v56, %v190_v61  ;;  %v358_v14 = vsel %vm357_vm7, %v172_v55, %v356_v11  ;;  %vm629_vm13 = vcmp.eq.s32.totalorder %v1280_v3, %v1446_v63  ;;  %vm628_vm14 = vcmp.eq.s32.totalorder %v1285_v5, %v1446_v63 }
  0x46   : > { %v1456_v15 = vand.u32 4294901760, %v430_v0  ;;  %v186_v16 = vmax.f32 %v184_v59, %v185_v2  ;;  %v197_v17 = vrot.slane %v196_v10, 2  ;;  %v360_v18 = vsel %vm359_vm8, %v179_v58, %v358_v14 }
  0x47   : > { %v192_v20 = vrot.slane %v191_v13, 1  ;;  %v1207_v21 = vsel %vm629_vm13, 1.0, %v1255_v8  ;;  %v1206_v23 = vsel %vm628_vm14, 1.0, %v1255_v8  ;;  %vm627_vm15 = vcmp.eq.s32.totalorder %v1277_v1, %v1446_v63 }
  0x48   : > { %432 = vmatmul.f32.gmra.mxu2 %v1456_v15  ;;  %v198_v24 = vmax.f32 %v196_v10, %v197_v17  ;;  %v362_v25 = vsel %vm361_vm9, %v186_v16, %v360_v18  ;;  %v637_v26 = vsel %vm388_vm0, %v1207_v21, 0  ;;  %v703_v27 = vsub.f32 %v1206_v23, %v1206_v23 }
  0x49   : > { %v193_v28 = vmax.f32 %v191_v13, %v192_v20  ;;  %1208 = vmatpush.msk.msra.mxu2 %vm388_vm0, %v1207_v21  ;;  %v697_v29 = vsub.f32 %v637_v26, %v637_v26  ;;  %v1205_v31 = vsel %vm627_vm15, 1.0, %v1255_v8  ;;  %v876_v53 = vadd.s32 2, %v1282_v4 }
  0x4a   : > { %v199_v32 = vrot.slane %v198_v24, 1  ;;  %v704_v33 = vand.u32 4294901760, %v703_v27  ;;  %v709_v34 = vsub.f32 %v1205_v31, %v1205_v31 }
  0x4b   : > { %v364_v9 = vsel %vm363_vm10, %v193_v28, %v362_v25  ;;  %v698_v35 = vand.u32 4294901760, %v697_v29  ;;  %1209 = vmatpush.msk.msra.mxu2 %vm628_vm14, %v1256_v19  ;;  %vm879_vm1 = vcmp.eq.s32.totalorder %v1280_v3, %v876_v53  ;;  %vm878_vm2 = vcmp.eq.s32.totalorder %v1285_v5, %v876_v53 }
  0x4c   : > { %v200_v36 = vmax.f32 %v198_v24, %v199_v32  ;;  %v705_v37 = vsub.f32 %v703_v27, %v704_v33  ;;  %v710_v38 = vand.u32 4294901760, %v709_v34  ;;  %v1219_v54 = vsel %vm879_vm1, 1.0, %v1255_v8 }
  0x4d   : > { %v699_v39 = vsub.f32 %v697_v29, %v698_v35  ;;  %1210 = vmatpush.msk.msra.mxu2 %vm627_vm15, %v1256_v19  ;;  %v887_v7 = vsel %vm388_vm0, %v1219_v54, 0  ;;  %v1218_v56 = vsel %vm878_vm2, 1.0, %v1255_v8  ;;  %vm877_vm3 = vcmp.eq.s32.totalorder %v1277_v1, %v876_v53 }
  0x4e   : > { %v366_v40 = vsel %vm365_vm11, %v200_v36, %v364_v9  ;;  %v711_v41 = vsub.f32 %v709_v34, %v710_v38  ;;  %v706_v44 = vand.u32 4294901760, %v705_v37  ;;  %v947_v4 = vsub.f32 %v887_v7, %v887_v7 }
  0x4f   : > { %v382_v6 = vsel %vm381_vm12, %v366_v40, 0  ;;  %v700_v43 = vand.u32 4294901760, %v699_v39  ;;  %v953_v58 = vsub.f32 %v1218_v56, %v1218_v56  ;;  %v1217_v63 = vsel %vm877_vm3, 1.0, %v1255_v8 }
  0x50   : > { %v1485_v45 = vand.u32 4294901760, %v382_v6  ;;  %v712_v46 = vand.u32 4294901760, %v711_v41  ;;  %v948_v55 = vand.u32 4294901760, %v947_v4  ;;  %v959_v0 = vsub.f32 %v1217_v63, %v1217_v63 }
  0x51   : > { %701 = vmatpush.msra.mxu3 %v700_v43  ;;  %v954_v60 = vand.u32 4294901760, %v953_v58 }
  0x52   : > { %v1488_v47 = vsub.f32 %v382_v6, %v1485_v45  ;;  %468 = vmatmul.f32.vlgmr.msra.gmra.mxu1 %v1485_v45  ;;  %v949_v3 = vsub.f32 %v947_v4, %v948_v55  ;;  %v960_v2 = vand.u32 4294901760, %v959_v0 }
  0x53   : > { %707 = vmatpush.msra.mxu3 %v706_v44  ;;  %1211 = vmatpush.msk.msra.mxu1 %vm388_vm0, %v1207_v21  ;;  %v955_v61 = vsub.f32 %v953_v58, %v954_v60 }
  0x54   : > { %v1493_v49 = vand.u32 4294901760, %v1488_v47  ;;  %504 = vmatmul.f32.vlgmr.msrb.gmra.mxu2 %v1488_v47  ;;  %v950_v59 = vand.u32 4294901760, %v949_v3  ;;  %v961_v10 = vsub.f32 %v959_v0, %v960_v2 }
  0x55   : > { %713 = vmatpush.msra.mxu3 %v712_v46  ;;  %1212 = vmatpush.msk.msra.mxu1 %vm628_vm14, %v1256_v19  ;;  %v956_v62 = vand.u32 4294901760, %v955_v61 }
  0x56   : > { %v414_v51 = vsub.f32 %v1488_v47, %v1493_v49  ;;  %540 = vmatmul.f32.vlgmr.msrb.gmra.mxu3 %v1493_v49  ;;  %819 = vmatpush.msrb.mxu2 %v698_v35  ;;  %v962_v11 = vand.u32 4294901760, %v961_v10 }
  0x57   : > { %1214 = vmatpush.msk.msrb.mxu3 %vm388_vm0, %v1207_v21  ;;  %1213 = vmatpush.msk.msra.mxu1 %vm627_vm15, %v1256_v19 }
  0x58   : > { %v1508_v52 = vand.u32 4294901760, %v414_v51  ;;  %823 = vmatpush.msrb.mxu2 %v704_v33 }
  0x59   : > { %1215 = vmatpush.msk.msrb.mxu3 %vm628_vm14, %v1256_v19 }
  0x5a   : > { %416 = vmatmul.f32.vlgmr.msra.gmra.mxu0 %v1508_v52  ;;  %614 = vmatmul.f32.vlgmr.msrb.gmra.mxu1 %v1485_v45 }
  0x5b   : > { %742 = vmatpush.msra.mxu0 %v697_v29  ;;  %827 = vmatpush.msrb.mxu2 %v710_v38 }
  0x5c   : > { %509 = vmatmul.f32.gmra.mxu2 %v1399_v22  ;;  %1216 = vmatpush.msk.msrb.mxu3 %vm627_vm15, %v1256_v19 }
  0x5d   : > { %745 = vmatpush.msra.mxu0 %v703_v27  ;;  %951 = vmatpush.msrb.mxu1 %v950_v59 }
  0x5e   : > { %546 = vmatmul.f32.gmra.mxu3 %v1403_v30 }
  0x5f   : > { %748 = vmatpush.msra.mxu0 %v709_v34  ;;  %957 = vmatpush.msrb.mxu1 %v956_v62 }
  0x61   : > { %963 = vmatpush.msrb.mxu1 %v962_v11 }
  0x62   : > { %582 = vmatmul.f32.vlgmr.msrb.gmra.mxu0 %v1485_v45  ;;  %618 = vmatmul.f32.gmra.mxu1 %v1394_v12 }
  0x63   : > { %1220 = vmatpush.msk.msrb.mxu0 %vm388_vm0, %v1219_v54 }
  0x64   : > { %514 = vmatmul.f32.gmra.mxu2 %v1437_v50 }
  0x65   : > { %1221 = vmatpush.msk.msrb.mxu0 %vm878_vm2, %v1256_v19 }
  0x66   : > { %552 = vmatmul.f32.gmra.mxu3 %v1442_v57 }
  0x67   : > { %1222 = vmatpush.msk.msrb.mxu0 %vm877_vm3, %v1256_v19 }
  0x6a   : > { %586 = vmatmul.f32.gmra.mxu0 %v1394_v12  ;;  %622 = vmatmul.f32.gmra.mxu1 %v1434_v42 }
  0x6c   : > { %663 = vmatmul.f32.vlgmr.msra.gmra.mxu2 %v1508_v52 }
  0x6d   : > { %992 = vmatpush.msra.mxu2 %v947_v4 }
  0x6e   : > { %715 = vmatmul.f32.vlgmr.msra.gmra.mxu3 %v1485_v45 }
  0x6f   : > { %1223 = vmatpush.msk.msra.mxu3 %vm388_vm0, %v1219_v54  ;;  %995 = vmatpush.msra.mxu2 %v953_v58 }
  0x71   : > { %1224 = vmatpush.msk.msra.mxu3 %vm878_vm2, %v1256_v19  ;;  %998 = vmatpush.msra.mxu2 %v959_v0 }
  0x72   : > { %590 = vmatmul.f32.gmra.mxu0 %v1434_v42  ;;  %787 = vmatmul.f32.vlgmr.msra.gmra.mxu1 %v1493_v49 }
  0x73   : > { %1225 = vmatpush.msk.msra.mxu3 %vm877_vm3, %v1256_v19  ;;  %1226 = vmatpush.msk.msra.mxu1 %vm388_vm0, %v1219_v54  ;;  %vm1126_vm0 = vcmask 48128  }
  0x74   : > { %671 = vmatmul.f32.gmra.mxu2 %v1414_v48 }
  0x75   : > { %1227 = vmatpush.msk.msra.mxu1 %vm878_vm2, %v1256_v19 }
  0x76   : > { %719 = vmatmul.f32.gmra.mxu3 %v1394_v12 }
  0x77   : > { %1228 = vmatpush.msk.msra.mxu1 %vm877_vm3, %v1256_v19 }
  0x7a   : > { %751 = vmatmul.f32.vlgmr.msra.gmra.mxu0 %v1488_v47  ;;  %793 = vmatmul.f32.gmra.mxu1 %v1403_v30 }
  0x7b   : > { %1069 = vmatpush.msra.mxu0 %v948_v55 }
  0x7c   : > { %679 = vmatmul.f32.gmra.mxu2 %v1456_v15 }
  0x7d   : > { %1073 = vmatpush.msra.mxu0 %v954_v60 }
  0x7e   : > { %723 = vmatmul.f32.gmra.mxu3 %v1434_v42 }
  0x7f   : > { %1077 = vmatpush.msra.mxu0 %v960_v2 }
  0x82   : > { %756 = vmatmul.f32.gmra.mxu0 %v1399_v22  ;;  %799 = vmatmul.f32.gmra.mxu1 %v1442_v57 }
  0x84   : > { %829 = vmatmul.f32.vlgmr.msrb.gmra.mxu2 %v1485_v45 }
  0x86   : > { %861 = vmatmul.f32.vlgmr.msrb.gmra.mxu3 %v1485_v45 }
  0x8a   : > { %761 = vmatmul.f32.gmra.mxu0 %v1437_v50  ;;  %965 = vmatmul.f32.vlgmr.msrb.gmra.mxu1 %v1485_v45 }
  0x8c   : > { %833 = vmatmul.f32.gmra.mxu2 %v1394_v12 }
  0x8e   : > { %865 = vmatmul.f32.gmra.mxu3 %v1394_v12 }
  0x92   : > { %913 = vmatmul.f32.vlgmr.msrb.gmra.mxu0 %v1508_v52  ;;  %969 = vmatmul.f32.gmra.mxu1 %v1394_v12 }
  0x94   : > { %837 = vmatmul.f32.gmra.mxu2 %v1434_v42 }
  0x96   : > { %869 = vmatmul.f32.gmra.mxu3 %v1434_v42 }
  0x9a   : > { %921 = vmatmul.f32.gmra.mxu0 %v1414_v48  ;;  %973 = vmatmul.f32.gmra.mxu1 %v1434_v42 }
  0x9c   : > { %1001 = vmatmul.f32.vlgmr.msra.gmra.mxu2 %v1488_v47 }
  0x9e   : > { %1037 = vmatmul.f32.vlgmr.msra.gmra.mxu3 %v1493_v49 }
  0xa2   : > { %929 = vmatmul.f32.gmra.mxu0 %v1456_v15  ;;  %1111 = vmatmul.f32.vlgmr.msra.gmra.mxu1 %v1485_v45 }
  0xa4   : > { %1006 = vmatmul.f32.gmra.mxu2 %v1399_v22 }
  0xa6   : > { %1043 = vmatmul.f32.gmra.mxu3 %v1403_v30 }
  0xaa   : > { %1079 = vmatmul.f32.vlgmr.msra.gmra.mxu0 %v1485_v45  ;;  %1115 = vmatmul.f32.gmra.mxu1 %v1394_v12 }
  0xac   : > { %1011 = vmatmul.f32.gmra.mxu2 %v1437_v50 }
  0xae   : > { %1049 = vmatmul.f32.gmra.mxu3 %v1442_v57 }
  0xb0   : > { %v473_v1 = vpop.f32.mrf.mxu3 }
  0xb2   : > { %1083 = vmatmul.f32.gmra.mxu0 %v1394_v12  ;;  %1119 = vmatmul.f32.gmra.mxu1 %v1434_v42 }
  0xb8   : > { %v425_v5 = vpop.f32.mrf.mxu2 }
  0xb9   : > { %v474_v8 = vadd.f32 %v473_v1, %v425_v5 }
  0xba   : > { %1087 = vmatmul.f32.gmra.mxu0 %v1434_v42 }
  0xc3   : > { %v477_v19 = vpop.f32.mrf.mxu3 }
  0xcb   : > { %v433_v22 = vpop.f32.mrf.mxu2 }
  0xcc   : > { %v478_v30 = vadd.f32 %v477_v19, %v433_v22 }
  0xcf   : > { %v469_v48 = vpop.f32.mrf.mxu1 }
  0xd7   : > { %v417_v13 = vpop.f32.mrf.mxu0  ;;  %v505_v14 = vpop.f32.mrf.mxu2 }
  0xd8   : > { %v470_v15 = vadd.f32 %v469_v48, %v417_v13  ;;  %v615_v16 = vpop.f32.mrf.mxu1 }
  0xd9   : > { %v541_v50 = vpop.f32.mrf.mxu3 }
  0xda   : > { %v506_v17 = vadd.f32 %v505_v14, %v470_v15 }
  0xdc   : > { %v542_v57 = vadd.f32 %v541_v50, %v506_v17 }
  0xdf   : > { %v583_v18 = vpop.f32.mrf.mxu0  ;;  %v510_v12 = vpop.f32.mrf.mxu2 }
  0xe0   : > { %v584_v20 = vadd.f32 %v583_v18, %v542_v57  ;;  %v511_v21 = vadd.f32 %v510_v12, %v474_v8  ;;  %v619_v23 = vpop.f32.mrf.mxu1 }
  0xe1   : > { %v547_v24 = vpop.f32.mrf.mxu3 }
  0xe2   : > { %v1598_v25 = vadd.f32 %v615_v16, %v584_v20  ;;  %v548_v42 = vadd.f32 %v547_v24, %v511_v21 }
  0xe7   : > { %v587_v26 = vpop.f32.mrf.mxu0  ;;  %v515_v27 = vpop.f32.mrf.mxu2 }
  0xe8   : > { %v588_v28 = vadd.f32 %v587_v26, %v548_v42  ;;  %v516_v29 = vadd.f32 %v515_v27, %v478_v30  ;;  %v623_v31 = vpop.f32.mrf.mxu1 }
  0xe9   : > { %v553_v32 = vpop.f32.mrf.mxu3 }
  0xea   : > { %v1600_v33 = vadd.f32 %v619_v23, %v588_v28  ;;  %v554_v34 = vadd.f32 %v553_v32, %v516_v29 }
  0xef   : > { %v591_v9 = vpop.f32.mrf.mxu0  ;;  %v664_v35 = vpop.f32.mrf.mxu2 }
  0xf0   : > { %v592_v36 = vadd.f32 %v591_v9, %v554_v34  ;;  %v788_v37 = vpop.f32.mrf.mxu1 }
  0xf1   : > { %v716_v38 = vpop.f32.mrf.mxu3 }
  0xf2   : > { %v1602_v39 = vadd.f32 %v623_v31, %v592_v36  ;;  %v717_v58 = vadd.f32 %v716_v38, %v664_v35 }
  0xf7   : > { %v752_v40 = vpop.f32.mrf.mxu0  ;;  %v672_v41 = vpop.f32.mrf.mxu2 }
  0xf8   : > { %v794_v6 = vpop.f32.mrf.mxu1  ;;  %v753_v61 = vadd.f32 %v752_v40, %v717_v58 }
  0xf9   : > { %v720_v43 = vpop.f32.mrf.mxu3 }
  0xfa   : > { %v789_v2 = vadd.f32 %v788_v37, %v753_v61  ;;  %v721_v10 = vadd.f32 %v720_v43, %v672_v41 }
  0xff   : > { %v757_v44 = vpop.f32.mrf.mxu0  ;;  %v680_v45 = vpop.f32.mrf.mxu2 }
 0x100   : > { %v800_v46 = vpop.f32.mrf.mxu1  ;;  %v758_v19 = vadd.f32 %v757_v44, %v721_v10 }
 0x101   : > { %v724_v47 = vpop.f32.mrf.mxu3 }
 0x102   : > { %v795_v15 = vadd.f32 %v794_v6, %v758_v19  ;;  %v725_v16 = vadd.f32 %v724_v47, %v680_v45 }
 0x107   : > { %v762_v49 = vpop.f32.mrf.mxu0  ;;  %v830_v51 = vpop.f32.mrf.mxu2 }
 0x108   : > { %v966_v52 = vpop.f32.mrf.mxu1  ;;  %v831_v5 = vadd.f32 %v830_v51, %v789_v2  ;;  %v763_v21 = vadd.f32 %v762_v49, %v725_v16 }
 0x109   : > { %v862_v53 = vpop.f32.mrf.mxu3 }
 0x10a   : > { %v863_v30 = vadd.f32 %v862_v53, %v831_v5  ;;  %v801_v31 = vadd.f32 %v800_v46, %v763_v21 }
 0x10c   : > { %v873_v18 = vmax.f32 %v1598_v25, %v863_v30 }
 0x10f   : > { %v914_v54 = vpop.f32.mrf.mxu0  ;;  %v834_v7 = vpop.f32.mrf.mxu2 }
 0x110   : > { %v970_v55 = vpop.f32.mrf.mxu1  ;;  %v967_v62 = vadd.f32 %v966_v52, %v914_v54  ;;  %v835_v12 = vadd.f32 %v834_v7, %v795_v15 }
 0x111   : > { %v866_v4 = vpop.f32.mrf.mxu3 }
 0x112   : > { %v867_v26 = vadd.f32 %v866_v4, %v835_v12 }
 0x114   : > { %v874_v9 = vmax.f32 %v1600_v33, %v867_v26 }
 0x117   : > { %v922_v3 = vpop.f32.mrf.mxu0  ;;  %v838_v56 = vpop.f32.mrf.mxu2 }
 0x118   : > { %v974_v60 = vpop.f32.mrf.mxu1  ;;  %v971_v48 = vadd.f32 %v970_v55, %v922_v3  ;;  %v839_v35 = vadd.f32 %v838_v56, %v801_v31 }
 0x119   : > { %v870_v59 = vpop.f32.mrf.mxu3 }
 0x11a   : > { %v871_v40 = vadd.f32 %v870_v59, %v839_v35 }
 0x11c   : > { %v875_v44 = vmax.f32 %v1602_v39, %v871_v40 }
 0x11f   : > { %v930_v63 = vpop.f32.mrf.mxu0  ;;  %v1002_v0 = vpop.f32.mrf.mxu2 }
 0x120   : > { %v1003_v11 = vadd.f32 %v1002_v0, %v967_v62  ;;  %v1112_v8 = vpop.f32.mrf.mxu1  ;;  %v975_v27 = vadd.f32 %v974_v60, %v930_v63 }
 0x121   : > { %v1038_v1 = vpop.f32.mrf.mxu3 }
 0x122   : > { %v1039_v22 = vadd.f32 %v1038_v1, %v1003_v11 }
 0x127   : > { %v1080_v13 = vpop.f32.mrf.mxu0  ;;  %v1007_v14 = vpop.f32.mrf.mxu2 }
 0x128   : > { %v1081_v50 = vadd.f32 %v1080_v13, %v1039_v22  ;;  %v1008_v17 = vadd.f32 %v1007_v14, %v971_v48  ;;  %v1116_v42 = vpop.f32.mrf.mxu1 }
 0x129   : > { %v1044_v57 = vpop.f32.mrf.mxu3 }
 0x12a   : > { %v1113_v20 = vadd.f32 %v1112_v8, %v1081_v50  ;;  %v1045_v24 = vadd.f32 %v1044_v57, %v1008_v17 }
 0x12c   : > { %v1123_v23 = vmax.f32 %v873_v18, %v1113_v20 }
 0x12e   : > { %1127 = vst.msk [vmem:[%s118_s17] sm:$0xff] %vm1126_vm0, %v1123_v23 }
 0x12f   : > { %v1084_v28 = vpop.f32.mrf.mxu0  ;;  %v1012_v29 = vpop.f32.mrf.mxu2 }
 0x130   : > { %v1085_v32 = vadd.f32 %v1084_v28, %v1045_v24  ;;  %v1013_v25 = vadd.f32 %v1012_v29, %v975_v27  ;;  %v1120_v6 = vpop.f32.mrf.mxu1 }
 0x131   : > { %v1050_v34 = vpop.f32.mrf.mxu3 }
 0x132   : > { %v1117_v36 = vadd.f32 %v1116_v42, %v1085_v32  ;;  %v1051_v38 = vadd.f32 %v1050_v34, %v1013_v25 }
 0x134   : > { %v1124_v37 = vmax.f32 %v874_v9, %v1117_v36 }
 0x136   : > { %1128 = vst.msk [vmem:[%s118_s17 + $0x8] sm:$0xff] %vm1126_vm0, %v1124_v37 }
 0x137   : > { %v1088_v41 = vpop.f32.mrf.mxu0 }
 0x138   : > { %v1089_v43 = vadd.f32 %v1088_v41, %v1051_v38 }
 0x13a   : > { %v1121_v45 = vadd.f32 %v1120_v6, %v1089_v43 }
 0x13c   : > { %v1125_v47 = vmax.f32 %v875_v44, %v1121_v45 }
 0x13e   : > { %1129 = vst.msk [vmem:[%s118_s17 + $0x10] sm:$0xff] %vm1126_vm0, %v1125_v47 }
 0x13f PF: > { %s11_s6 = sadd.s32 1, %s1253_s6  }
 0x140   : > { %p8_p5 = scmp.ge.s32.totalorder %s11_s6, 4  }
 0x142   :  { %10 = sbr.rel (!%p8_p5) target bundleno = 1 (0x1), region = 54 }

</bundles_post_ra>
